<compile_context>
chip_gen: v7x
topology: tpu7x:2x2x1
jax: 0.10.0
libtpu: 0.0.40
codegen_flags: <defaults>
</compile_context>

<pallas_src>
import functools

import jax
import jax.numpy as jnp
from jax.experimental import pallas as pl
from jax.experimental.pallas import tpu as pltpu

EMB = 20                       # embedding_size
H1, H2, H3, H4 = 256, 64, 16, 1
TM_MAX = 512                   # row-tile upper bound (tunable)
NEG_SLOPE = 0.01               # nn.LeakyReLU default


def _leaky(h):
    return jnp.where(h > 0, h, NEG_SLOPE * h)


def _row_tile(m):
    """Largest useful sublane-aligned row tile for M rows (<= TM_MAX)."""
    if m >= TM_MAX:
        return TM_MAX
    return max(8, ((m + 7) // 8) * 8)


def qmlp_kernel(u_ref, d_ref, w1u_ref, w1d_ref, b1_ref, w2_ref, b2_ref,
                w3_ref, b3_ref, w4_ref, b4_ref, o_ref):
    # Layer 1: fused concat -> split-K matmul (user half + doc half), f32 acc.
    h = (jnp.dot(u_ref[...], w1u_ref[...], preferred_element_type=jnp.float32)
         + jnp.dot(d_ref[...], w1d_ref[...], preferred_element_type=jnp.float32)
         + b1_ref[...])
    h = _leaky(h)
    h = _leaky(jnp.dot(h.astype(jnp.bfloat16), w2_ref[...],
                       preferred_element_type=jnp.float32) + b2_ref[...])
    h = _leaky(jnp.dot(h.astype(jnp.bfloat16), w3_ref[...],
                       preferred_element_type=jnp.float32) + b3_ref[...])
    o_ref[...] = (jnp.dot(h.astype(jnp.bfloat16), w4_ref[...],
                          preferred_element_type=jnp.float32) + b4_ref[...])


def qmlp_pallas(user_rep, doc_flat, params):
    """user_rep, doc_flat: (M, E) -> (M, 1) float32 via the 4-layer MLP."""
    w1, b1, w2, b2, w3, b3, w4, b4 = params
    M, E = doc_flat.shape
    tm = _row_tile(M)
    grid = (pl.cdiv(M, tm),)

    # bf16 matmul operands (f32 accumulation inside the kernel).
    u_bf = user_rep.astype(jnp.bfloat16)
    d_bf = doc_flat.astype(jnp.bfloat16)
    w1u = w1[:E].astype(jnp.bfloat16)          # user half of layer-1 weight
    w1d = w1[E:].astype(jnp.bfloat16)          # doc  half of layer-1 weight
    w2b = w2.astype(jnp.bfloat16)
    w3b = w3.astype(jnp.bfloat16)
    w4b = w4.astype(jnp.bfloat16)

    layer_flops = 2 * E * H1 * 2 + 2 * (H1 * H2 + H2 * H3 + H3 * H4)
    weight_bytes = 2 * (2 * E * H1 + H1 * H2 + H2 * H3 + H3 * H4) \
        + 4 * (H1 + H2 + H3 + H4)
    cost = pl.CostEstimate(
        flops=M * layer_flops,
        transcendentals=0,
        bytes_accessed=M * (2 * E * 2 + 4 * H4) + weight_bytes,
    )

    out = pl.pallas_call(
        qmlp_kernel,
        out_shape=jax.ShapeDtypeStruct((M, H4), jnp.float32),
        grid=grid,
        in_specs=[
            pl.BlockSpec((tm, E), lambda i: (i, 0)),    # user rows (tiled)
            pl.BlockSpec((tm, E), lambda i: (i, 0)),    # doc rows  (tiled)
            pl.BlockSpec((E, H1), lambda i: (0, 0)),    # W1[:E]  (resident)
            pl.BlockSpec((E, H1), lambda i: (0, 0)),    # W1[E:]
            pl.BlockSpec((1, H1), lambda i: (0, 0)),    # b1
            pl.BlockSpec((H1, H2), lambda i: (0, 0)),   # W2^T
            pl.BlockSpec((1, H2), lambda i: (0, 0)),    # b2
            pl.BlockSpec((H2, H3), lambda i: (0, 0)),   # W3^T
            pl.BlockSpec((1, H3), lambda i: (0, 0)),    # b3
            pl.BlockSpec((H3, H4), lambda i: (0, 0)),   # W4^T
            pl.BlockSpec((1, H4), lambda i: (0, 0)),    # b4
        ],
        out_specs=pl.BlockSpec((tm, H4), lambda i: (i, 0)),
        compiler_params=pltpu.CompilerParams(
            dimension_semantics=("parallel",)),
        cost_estimate=cost,
    )(u_bf, d_bf, w1u, w1d, b1, w2b, b2, w3b, b3, w4b, b4)
    return out


def init_params(key, embedding_size=EMB):
    """Deterministic init mimicking nn.Linear default (uniform +/- 1/sqrt(fan_in)).

    Weights are returned already transposed to (in_features, out_features), f32.
    """
    dims = [2 * embedding_size, H1, H2, H3, H4]
    params = []
    for fan_in, fan_out in zip(dims[:-1], dims[1:]):
        key, kw, kb = jax.random.split(key, 3)
        bound = 1.0 / jnp.sqrt(float(fan_in))
        w_t = jax.random.uniform(kw, (fan_in, fan_out), jnp.float32,
                                 minval=-bound, maxval=bound)
        b = jax.random.uniform(kb, (1, fan_out), jnp.float32,
                               minval=-bound, maxval=bound)
        params += [w_t, b]
    # no_click_embedding exists on the module but is unused in forward().
    key, kn = jax.random.split(key)
    no_click_embedding = jax.random.normal(kn, (embedding_size,),
                                           jnp.float32) / 10.0
    return tuple(params), no_click_embedding


@functools.partial(jax.jit, static_argnums=())
def qmodel_forward(user, doc, params):
    """Exact replica of QModel.forward semantics.

    user: (B, E), doc: (B, N, E) -> (B, N+1) float32.
    """
    batch_size, num_docs, embedding_size = doc.shape
    doc_flat = doc.reshape(batch_size * num_docs, embedding_size)
    # torch `user.repeat(num_docs, 1)` == tile along dim 0 (faithful quirk:
    # row r pairs user[r % B] with doc[r // N, r % N]).
    user_repeated = jnp.tile(user, (num_docs, 1))
    x = qmlp_pallas(user_repeated, doc_flat, params)            # (B*N, 1)
    x_no_click = jnp.zeros((batch_size, 1), jnp.float32)
    return jnp.concatenate([x.reshape(batch_size, num_docs), x_no_click],
                           axis=1)


def qmodel_forward_ref(user, doc, params, dot_dtype=jnp.float32):
    """Pure-JAX reference. dot_dtype=bf16 mirrors the kernel's MXU precision."""
    w1, b1, w2, b2, w3, b3, w4, b4 = params
    B, N, E = doc.shape
    doc_flat = doc.reshape(B * N, E)
    user_repeated = jnp.tile(user, (N, 1))
    h = jnp.concatenate([user_repeated, doc_flat], axis=1)

    def lin(a, w, b):
        return jnp.dot(a.astype(dot_dtype), w.astype(dot_dtype),
                       preferred_element_type=jnp.float32) + b

    h = _leaky(lin(h, w1, b1))
    h = _leaky(lin(h, w2, b2))
    h = _leaky(lin(h, w3, b3))
    h = lin(h, w4, b4)
    return jnp.concatenate([h.reshape(B, N), jnp.zeros((B, 1), jnp.float32)],
                           axis=1)


if __name__ == "__main__":
    key = jax.random.PRNGKey(0)
    params, _no_click = init_params(key, EMB)

    kb, ku, kd = jax.random.split(jax.random.PRNGKey(0), 3)
    batch_size, num_docs = 2, 8
    user = jax.random.normal(ku, (batch_size, EMB), jnp.float32)
    doc = jax.random.normal(kd, (batch_size, num_docs, EMB), jnp.float32)

    out = qmodel_forward(user, doc, params)
    out = jax.block_until_ready(out)
    assert out.shape == (batch_size, num_docs + 1), out.shape

    # Precision-matched reference (bf16 matmuls, f32 accumulation).
    ref_bf16 = qmodel_forward_ref(user, doc, params, dot_dtype=jnp.bfloat16)
    assert jnp.allclose(out, ref_bf16, atol=1e-2, rtol=1e-2), \
        "mismatch vs bf16 reference"
    # Loose sanity check against the full-f32 reference.
    ref_f32 = qmodel_forward_ref(user, doc, params, dot_dtype=jnp.float32)
    assert jnp.allclose(out, ref_f32, atol=5e-2, rtol=5e-2), \
        "mismatch vs f32 reference"

    print("KERNEL_OK")
</pallas_src>

<mosaic_0001>
module attributes {stable_mosaic.version = 11 : i64} {
  func.func @qmlp_kernel(%arg0: i32, %arg1: memref<16x20xbf16, #tpu.memory_space<vmem>>, %arg2: memref<16x20xbf16, #tpu.memory_space<vmem>>, %arg3: memref<20x256xbf16, #tpu.memory_space<vmem>>, %arg4: memref<20x256xbf16, #tpu.memory_space<vmem>>, %arg5: memref<1x256xf32, #tpu.memory_space<vmem>>, %arg6: memref<256x64xbf16, #tpu.memory_space<vmem>>, %arg7: memref<1x64xf32, #tpu.memory_space<vmem>>, %arg8: memref<64x16xbf16, #tpu.memory_space<vmem>>, %arg9: memref<1x16xf32, #tpu.memory_space<vmem>>, %arg10: memref<16x1xbf16, #tpu.memory_space<vmem>>, %arg11: memref<1x1xf32, #tpu.memory_space<vmem>>, %arg12: memref<16x1xf32, #tpu.memory_space<vmem>>) attributes {dimension_semantics = [#tpu.dimension_semantics<parallel>], iteration_bounds = array<i64: 1>, scalar_prefetch = 0 : i64, scratch_operands = 0 : i64, tpu.core_type = #tpu.core_type<tc>, window_params = [{transform_indices = @transform_0, window_bounds = array<i64: 16, 20>}, {transform_indices = @transform_1, window_bounds = array<i64: 16, 20>}, {pipeline_mode = #tpu.pipeline_mode<synchronous>, transform_indices = @transform_2, window_bounds = array<i64: 20, 256>}, {pipeline_mode = #tpu.pipeline_mode<synchronous>, transform_indices = @transform_3, window_bounds = array<i64: 20, 256>}, {pipeline_mode = #tpu.pipeline_mode<synchronous>, transform_indices = @transform_4, window_bounds = array<i64: 1, 256>}, {pipeline_mode = #tpu.pipeline_mode<synchronous>, transform_indices = @transform_5, window_bounds = array<i64: 256, 64>}, {pipeline_mode = #tpu.pipeline_mode<synchronous>, transform_indices = @transform_6, window_bounds = array<i64: 1, 64>}, {pipeline_mode = #tpu.pipeline_mode<synchronous>, transform_indices = @transform_7, window_bounds = array<i64: 64, 16>}, {pipeline_mode = #tpu.pipeline_mode<synchronous>, transform_indices = @transform_8, window_bounds = array<i64: 1, 16>}, {pipeline_mode = #tpu.pipeline_mode<synchronous>, transform_indices = @transform_9, window_bounds = array<i64: 16, 1>}, {pipeline_mode = #tpu.pipeline_mode<synchronous>, transform_indices = @transform_10, window_bounds = array<i64: 1, 1>}, {transform_indices = @transform_11, window_bounds = array<i64: 16, 1>}]} {
    %c0 = arith.constant 0 : index
    %c0_0 = arith.constant 0 : index
    %0 = vector.load %arg1[%c0, %c0_0] : memref<16x20xbf16, #tpu.memory_space<vmem>>, vector<16x20xbf16>
    %c0_1 = arith.constant 0 : index
    %c0_2 = arith.constant 0 : index
    %1 = vector.load %arg3[%c0_1, %c0_2] : memref<20x256xbf16, #tpu.memory_space<vmem>>, vector<20x256xbf16>
    %cst = arith.constant dense<0.000000e+00> : vector<16x256xf32>
    %2 = tpu.matmul %0, %1, %cst {dimension_numbers = #tpu.dot_dimension_numbers<[1], [0], [0], [1], [0, 0, 1, 1], [], []>} : vector<16x20xbf16>, vector<20x256xbf16>, vector<16x256xf32> -> vector<16x256xf32>
    %c0_3 = arith.constant 0 : index
    %c0_4 = arith.constant 0 : index
    %3 = vector.load %arg2[%c0_3, %c0_4] : memref<16x20xbf16, #tpu.memory_space<vmem>>, vector<16x20xbf16>
    %c0_5 = arith.constant 0 : index
    %c0_6 = arith.constant 0 : index
    %4 = vector.load %arg4[%c0_5, %c0_6] : memref<20x256xbf16, #tpu.memory_space<vmem>>, vector<20x256xbf16>
    %cst_7 = arith.constant dense<0.000000e+00> : vector<16x256xf32>
    %5 = tpu.matmul %3, %4, %cst_7 {dimension_numbers = #tpu.dot_dimension_numbers<[1], [0], [0], [1], [0, 0, 1, 1], [], []>} : vector<16x20xbf16>, vector<20x256xbf16>, vector<16x256xf32> -> vector<16x256xf32>
    %6 = arith.addf %2, %5 : vector<16x256xf32>
    %c0_8 = arith.constant 0 : index
    %c0_9 = arith.constant 0 : index
    %7 = vector.load %arg5[%c0_8, %c0_9] : memref<1x256xf32, #tpu.memory_space<vmem>>, vector<1x256xf32>
    %8 = vector.broadcast %7 : vector<1x256xf32> to vector<16x256xf32>
    %9 = arith.addf %6, %8 : vector<16x256xf32>
    %cst_10 = arith.constant 0.000000e+00 : f32
    %10 = vector.broadcast %cst_10 : f32 to vector<16x256xf32>
    %11 = arith.cmpf ogt, %9, %10 : vector<16x256xf32>
    %cst_11 = arith.constant 0.00999999977 : f32
    %12 = vector.broadcast %cst_11 : f32 to vector<16x256xf32>
    %13 = arith.mulf %12, %9 : vector<16x256xf32>
    %14 = arith.select %11, %9, %13 : vector<16x256xi1>, vector<16x256xf32>
    %15 = arith.truncf %14 : vector<16x256xf32> to vector<16x256xbf16>
    %c0_12 = arith.constant 0 : index
    %c0_13 = arith.constant 0 : index
    %16 = vector.load %arg6[%c0_12, %c0_13] : memref<256x64xbf16, #tpu.memory_space<vmem>>, vector<256x64xbf16>
    %cst_14 = arith.constant dense<0.000000e+00> : vector<16x64xf32>
    %17 = tpu.matmul %15, %16, %cst_14 {dimension_numbers = #tpu.dot_dimension_numbers<[1], [0], [0], [1], [0, 0, 1, 1], [], []>} : vector<16x256xbf16>, vector<256x64xbf16>, vector<16x64xf32> -> vector<16x64xf32>
    %c0_15 = arith.constant 0 : index
    %c0_16 = arith.constant 0 : index
    %18 = vector.load %arg7[%c0_15, %c0_16] : memref<1x64xf32, #tpu.memory_space<vmem>>, vector<1x64xf32>
    %19 = vector.broadcast %18 : vector<1x64xf32> to vector<16x64xf32>
    %20 = arith.addf %17, %19 : vector<16x64xf32>
    %cst_17 = arith.constant 0.000000e+00 : f32
    %21 = vector.broadcast %cst_17 : f32 to vector<16x64xf32>
    %22 = arith.cmpf ogt, %20, %21 : vector<16x64xf32>
    %cst_18 = arith.constant 0.00999999977 : f32
    %23 = vector.broadcast %cst_18 : f32 to vector<16x64xf32>
    %24 = arith.mulf %23, %20 : vector<16x64xf32>
    %25 = arith.select %22, %20, %24 : vector<16x64xi1>, vector<16x64xf32>
    %26 = arith.truncf %25 : vector<16x64xf32> to vector<16x64xbf16>
    %c0_19 = arith.constant 0 : index
    %c0_20 = arith.constant 0 : index
    %27 = vector.load %arg8[%c0_19, %c0_20] : memref<64x16xbf16, #tpu.memory_space<vmem>>, vector<64x16xbf16>
    %cst_21 = arith.constant dense<0.000000e+00> : vector<16x16xf32>
    %28 = tpu.matmul %26, %27, %cst_21 {dimension_numbers = #tpu.dot_dimension_numbers<[1], [0], [0], [1], [0, 0, 1, 1], [], []>} : vector<16x64xbf16>, vector<64x16xbf16>, vector<16x16xf32> -> vector<16x16xf32>
    %c0_22 = arith.constant 0 : index
    %c0_23 = arith.constant 0 : index
    %29 = vector.load %arg9[%c0_22, %c0_23] : memref<1x16xf32, #tpu.memory_space<vmem>>, vector<1x16xf32>
    %30 = vector.broadcast %29 : vector<1x16xf32> to vector<16x16xf32>
    %31 = arith.addf %28, %30 : vector<16x16xf32>
    %cst_24 = arith.constant 0.000000e+00 : f32
    %32 = vector.broadcast %cst_24 : f32 to vector<16x16xf32>
    %33 = arith.cmpf ogt, %31, %32 : vector<16x16xf32>
    %cst_25 = arith.constant 0.00999999977 : f32
    %34 = vector.broadcast %cst_25 : f32 to vector<16x16xf32>
    %35 = arith.mulf %34, %31 : vector<16x16xf32>
    %36 = arith.select %33, %31, %35 : vector<16x16xi1>, vector<16x16xf32>
    %37 = arith.truncf %36 : vector<16x16xf32> to vector<16x16xbf16>
    %c0_26 = arith.constant 0 : index
    %c0_27 = arith.constant 0 : index
    %38 = vector.load %arg10[%c0_26, %c0_27] : memref<16x1xbf16, #tpu.memory_space<vmem>>, vector<16x1xbf16>
    %cst_28 = arith.constant dense<0.000000e+00> : vector<16x1xf32>
    %39 = tpu.matmul %37, %38, %cst_28 {dimension_numbers = #tpu.dot_dimension_numbers<[1], [0], [0], [1], [0, 0, 1, 1], [], []>} : vector<16x16xbf16>, vector<16x1xbf16>, vector<16x1xf32> -> vector<16x1xf32>
    %c0_29 = arith.constant 0 : index
    %c0_30 = arith.constant 0 : index
    %40 = vector.load %arg11[%c0_29, %c0_30] : memref<1x1xf32, #tpu.memory_space<vmem>>, vector<1x1xf32>
    %41 = vector.broadcast %40 : vector<1x1xf32> to vector<16x1xf32>
    %42 = arith.addf %39, %41 : vector<16x1xf32>
    %c0_31 = arith.constant 0 : index
    %c0_32 = arith.constant 0 : index
    %43 = vector.load %arg12[%c0_31, %c0_32] : memref<16x1xf32, #tpu.memory_space<vmem>>, vector<16x1xf32>
    tpu.vector_store %arg12[%c0_31, %c0_32], %42 {strides = array<i32>} : memref<16x1xf32, #tpu.memory_space<vmem>>, vector<16x1xf32>,
    return
  }
  func.func @transform_0(%arg0: i32) -> (i32, i32) {
    %c0_i32 = arith.constant 0 : i32
    %c0_i32_0 = arith.constant 0 : i32
    return %arg0, %c0_i32 : i32, i32
  }
  func.func @transform_1(%arg0: i32) -> (i32, i32) {
    %c0_i32 = arith.constant 0 : i32
    %c0_i32_0 = arith.constant 0 : i32
    return %arg0, %c0_i32 : i32, i32
  }
  func.func @transform_2(%arg0: i32) -> (i32, i32) {
    %c0_i32 = arith.constant 0 : i32
    %c0_i32_0 = arith.constant 0 : i32
    %c0_i32_1 = arith.constant 0 : i32
    return %c0_i32, %c0_i32_0 : i32, i32
  }
  func.func @transform_3(%arg0: i32) -> (i32, i32) {
    %c0_i32 = arith.constant 0 : i32
    %c0_i32_0 = arith.constant 0 : i32
    %c0_i32_1 = arith.constant 0 : i32
    return %c0_i32, %c0_i32_0 : i32, i32
  }
  func.func @transform_4(%arg0: i32) -> (i32, i32) {
    %c0_i32 = arith.constant 0 : i32
    %c0_i32_0 = arith.constant 0 : i32
    %c0_i32_1 = arith.constant 0 : i32
    return %c0_i32, %c0_i32_0 : i32, i32
  }
  func.func @transform_5(%arg0: i32) -> (i32, i32) {
    %c0_i32 = arith.constant 0 : i32
    %c0_i32_0 = arith.constant 0 : i32
    %c0_i32_1 = arith.constant 0 : i32
    return %c0_i32, %c0_i32_0 : i32, i32
  }
  func.func @transform_6(%arg0: i32) -> (i32, i32) {
    %c0_i32 = arith.constant 0 : i32
    %c0_i32_0 = arith.constant 0 : i32
    %c0_i32_1 = arith.constant 0 : i32
    return %c0_i32, %c0_i32_0 : i32, i32
  }
  func.func @transform_7(%arg0: i32) -> (i32, i32) {
    %c0_i32 = arith.constant 0 : i32
    %c0_i32_0 = arith.constant 0 : i32
    %c0_i32_1 = arith.constant 0 : i32
    return %c0_i32, %c0_i32_0 : i32, i32
  }
  func.func @transform_8(%arg0: i32) -> (i32, i32) {
    %c0_i32 = arith.constant 0 : i32
    %c0_i32_0 = arith.constant 0 : i32
    %c0_i32_1 = arith.constant 0 : i32
    return %c0_i32, %c0_i32_0 : i32, i32
  }
  func.func @transform_9(%arg0: i32) -> (i32, i32) {
    %c0_i32 = arith.constant 0 : i32
    %c0_i32_0 = arith.constant 0 : i32
    %c0_i32_1 = arith.constant 0 : i32
    return %c0_i32, %c0_i32_0 : i32, i32
  }
  func.func @transform_10(%arg0: i32) -> (i32, i32) {
    %c0_i32 = arith.constant 0 : i32
    %c0_i32_0 = arith.constant 0 : i32
    %c0_i32_1 = arith.constant 0 : i32
    return %c0_i32, %c0_i32_0 : i32, i32
  }
  func.func @transform_11(%arg0: i32) -> (i32, i32) {
    %c0_i32 = arith.constant 0 : i32
    %c0_i32_0 = arith.constant 0 : i32
    return %arg0, %c0_i32 : i32, i32
  }
}

</mosaic_0001>

<bundles_post_ra>
// kernel: qmodel_forward.1
= control target key start
LH: loop header
LB: loop body
LE: loop exit
PB: predicated region body
PF: predicated region fallthrough
CT: control target
= control target key end

     0   :  { %vm75_vm0 = vcmask 1041408   ;;  %v695_v1 = vmov 0   ;;  %vm71_vm1 = vcmask 162816   ;;  %v696_v31 = vmov 0.0   ;;  %s878_s3 = inlined_call_operand.vmem [shape: bf16[20,256], index: 3, kind: input, shape index: {}]   ;;  %s879_s1 = inlined_call_operand.vmem [shape: bf16[16,20], index: 1, kind: input, shape index: {}]   ;;  %s880_s2 = inlined_call_operand.vmem [shape: bf16[20,256], index: 2, kind: input, shape index: {}]   ;;  %s881_s0 = inlined_call_operand.vmem [shape: bf16[16,20], index: 0, kind: input, shape index: {}]   ;;  %s882_s5 = inlined_call_operand.vmem [shape: bf16[256,64], index: 5, kind: input, shape index: {}]   ;;  %s883_s7 = inlined_call_operand.vmem [shape: bf16[64,16], index: 7, kind: input, shape index: {}]   ;;  %s884_s4 = inlined_call_operand.vmem [shape: f32[1,256], index: 4, kind: input, shape index: {}]   ;;  %s885_s6 = inlined_call_operand.vmem [shape: f32[1,64], index: 6, kind: input, shape index: {}]   ;;  %s886_s9 = inlined_call_operand.vmem [shape: bf16[16,1], index: 9, kind: input, shape index: {}]   ;;  %s887_s10 = inlined_call_operand.<no memory space> [shape: f32[1,1], index: 10, kind: input, shape index: {}]   ;;  %s888_s8 = inlined_call_operand.vmem [shape: f32[1,16], index: 8, kind: input, shape index: {}]   ;;  %s889_s11 = inlined_call_operand.vmem [shape: f32[16,1], index: 11, kind: output, shape index: {}]  }
   0x1   :  { %v50_v0 = vld [vmem:[%s878_s3 + $0x10] sm:$0x33]  ;;  %114 = vmatprep.mubr.bf16.mxu0 %v695_v1  ;;  %v662_v2 = vld [vmem:[%s878_s3 + $0x4] ss:$8 sps:$4 sm:$0xff]   ;;  %v665_v4 = vld [vmem:[%s878_s3] ss:$8 sps:$4 sm:$0xff]   ;;  %v199_v33 = vlaneseq }
   0x2   :  { %v572_v3 = vcombine.high %v50_v0, %v50_v0  ;;  %v571_v5 = vcombine.low %v50_v0, %v50_v0  ;;  %82 = vmatprep.subr.bf16.mxu0 %v662_v2  ;;  %v670_v7 = vld [vmem:[%s880_s2 + $0x4] ss:$8 sps:$4 sm:$0xff]   ;;  %v45_v9 = vld [vmem:[%s880_s2 + $0x10] sm:$0x33]  ;;  %v668_v10 = vld [vmem:[%s880_s2] ss:$8 sps:$4 sm:$0xff]  }
   0x3   :  { %83 = vmatpush1.bf16.msra.mxu0 %v665_v4  ;;  %v667_v8 = vld [vmem:[%s879_s1] sm:$0xff]   ;;  %v676_v13 = vld [vmem:[%s882_s5 + $0x48] sm:$0xff]   ;;  %v579_v14 = vcombine.high %v45_v9, %v45_v9  ;;  %v578_v15 = vcombine.low %v45_v9, %v45_v9  ;;  %v678_v17 = vld [vmem:[%s882_s5 + $0x50] sm:$0xff]   ;;  %v200_v34 = vshrl.u32 %v199_v33, 7  ;;  %vm697_vm6 = vmmov 0  }
   0x4   :  { %v77_v6 = vsel %vm75_vm0, %v571_v5, 0  ;;  %573 = vmatprep.subr.msk.bf16.mxu0 %vm75_vm0, %v572_v3  ;;  %v674_v11 = vld [vmem:[%s882_s5 + $0x40] sm:$0xff]   ;;  %v677_v16 = vld [vmem:[%s882_s5 + $0x8] sm:$0xff]   ;;  %v679_v19 = vld [vmem:[%s882_s5 + $0x10] sm:$0xff]   ;;  %vm449_vm9 = vcmask 523264   ;;  %vm516_vm12 = vcmask 130048  }
   0x5   :  { %v675_v12 = vld [vmem:[%s882_s5] sm:$0xff]   ;;  %608 = vmatprep.subr.bf16.mxu1 %v674_v11  ;;  %v149_v18 = vsel %vm75_vm0, %v578_v15, 0  ;;  %v680_v20 = vld [vmem:[%s882_s5 + $0x58] sm:$0xff]   ;;  %v684_v25 = vld [vmem:[%s882_s5 + $0x68] sm:$0xff]   ;;  %v201_v35 = vsub.s32 0, %v200_v34  ;;  %v205_v37 = vsub.s32 1, %v200_v34 }
   0x6   :  { %609 = vmatpush3.bf16.msra.mxu1 %v675_v12  ;;  %v681_v21 = vld [vmem:[%s882_s5 + $0x18] sm:$0xff]   ;;  %v682_v22 = vld [vmem:[%s882_s5 + $0x60] sm:$0xff]   ;;  %v685_v26 = vld [vmem:[%s882_s5 + $0x28] sm:$0xff]   ;;  %v16_v12 = vstv %s887_s10  ;;  %vm561_vm13 = vcmask 7168  }
   0x7   :  { %85 = vmatpush1.bf16.msra.mxu0 %v77_v6  ;;  %610 = vmatprep.subr.bf16.mxu1 %v676_v13  ;;  %v673_v23 = vld [vmem:[%s881_s0] sm:$0xff]   ;;  %v686_v27 = vld [vmem:[%s882_s5 + $0x70] sm:$0xff]   ;;  %v688_v29 = vld [vmem:[%s882_s5 + $0x78] sm:$0xff]   ;;  %17 = vst [vmem:[#allocation2] sm:$0x1] %v16_v12 }
   0x8   :  { %154 = vmatprep.subr.bf16.mxu0 %v670_v7  ;;  %v683_v24 = vld [vmem:[%s882_s5 + $0x20] sm:$0xff]   ;;  %v687_v28 = vld [vmem:[%s882_s5 + $0x30] sm:$0xff]   ;;  %v689_v30 = vld [vmem:[%s882_s5 + $0x38] sm:$0xff]  }
   0x9   :  { %v690_v32 = vld [vmem:[%s883_s7] sm:$0xff]   ;;  %v691_v58 = vld [vmem:[%s883_s7 + $0x8] sm:$0xff]   ;;  %v692_v59 = vld [vmem:[%s883_s7 + $0x10] sm:$0xff]  }
   0xa   :  { %574 = vmatmul.mubr.msk.bf16.vlgmr.msra.gmra.mrb[0].mxu0 %vm71_vm1, %v667_v8  ;;  %611 = vmatpush3.bf16.msra.mxu1 %v677_v16  ;;  %v197_v36 = vld [vmem:[%s884_s4] sm:$0x3]  ;;  %v693_v60 = vld [vmem:[%s883_s7 + $0x18] sm:$0xff]  }
   0xb   :  { %155 = vmatpush1.bf16.msra.mxu0 %v668_v10  ;;  %186 = vmatprep.mubr.bf16.mxu0 %v695_v1  ;;  %v202_v38 = vrot.slane %v197_v36, %v201_v35  ;;  %v206_v39 = vrot.slane %v197_v36, %v205_v37  ;;  %v582_v62 = vld [vmem:[%s885_s6] ss:$0 sm:$0xff] }
   0xc   :  { %580 = vmatprep.subr.msk.bf16.mxu0 %vm75_vm0, %v579_v14  ;;  %612 = vmatprep.subr.bf16.mxu1 %v678_v17  ;;  %v694_v11 = vld [vmem:[%s886_s9] sm:$0xff]  }
   0xd   :  { %v599_v13 = vld [vmem:[%s888_s8] ss:$0 sm:$0xff] }
   0xe   :  { %613 = vmatpush3.bf16.msra.mxu1 %v679_v19 }
   0xf   :  { %157 = vmatpush1.bf16.msra.mxu0 %v149_v18  ;;  %614 = vmatprep.subr.bf16.mxu1 %v680_v20 }
  0x10   :  { %637 = vmatprep.subr.bf16.mxu0 %v696_v31 }
  0x12   :  { %615 = vmatpush3.bf16.msra.mxu1 %v681_v21 }
  0x13   :  { %616 = vmatprep.subr.bf16.mxu1 %v682_v22 }
  0x16   :  { %581 = vmatmul.mubr.msk.bf16.vlgmr.msra.gmra.mrb[0].mxu0 %vm71_vm1, %v673_v23  ;;  %617 = vmatpush3.bf16.msra.mxu1 %v683_v24 }
  0x17   :  { %618 = vmatprep.subr.bf16.mxu1 %v684_v25  ;;  %638 = vmatpush3.bf16.msra.mxu0 %v690_v32  ;;  %v605_v25 = vld [vmem:[#allocation2] ss:$0 sm:$0xff] }
  0x18   :  { %639 = vmatprep.subr.bf16.mxu0 %v696_v31  ;;  %645 = vmatprep.mubr.msk.bf16.mxu0 %vm697_vm6, %v696_v31 }
  0x1a   :  { %619 = vmatpush3.bf16.msra.mxu1 %v685_v26 }
  0x1b   :  { %620 = vmatprep.subr.bf16.mxu1 %v686_v27  ;;  %640 = vmatpush3.bf16.msra.mxu0 %v691_v58 }
  0x1c   :  { %641 = vmatprep.subr.bf16.mxu0 %v696_v31 }
  0x1e   :  { %621 = vmatpush3.bf16.msra.mxu1 %v687_v28 }
  0x1f   :  { %622 = vmatprep.subr.bf16.mxu1 %v688_v29  ;;  %642 = vmatpush3.bf16.msra.mxu0 %v692_v59 }
  0x20   :  { %643 = vmatprep.subr.bf16.mxu0 %v696_v31 }
  0x22   :  { %623 = vmatpush3.bf16.msra.mxu1 %v689_v30 }
  0x23   :  { %644 = vmatpush3.bf16.msra.mxu0 %v693_v60 }
  0x24   :  { %649 = vmatprep.subr.bf16.mxu0 %v696_v31 }
  0xe9   :  { %v188_v40 = vpop.f32.mrb[0].mxu0 }
  0xea   :  { %v209_v41 = vadd.f32 %v202_v38, %v188_v40  ;;  %v190_v42 = vpop.f32.mrb[1].mxu0 }
  0xeb   :  { %v210_v43 = vadd.f32 %v206_v39, %v190_v42  ;;  %v192_v44 = vpop.f32.mrb[2].mxu0 }
  0xec   :  { %v217_v45 = vmul.f32 0.01, %v209_v41  ;;  %v211_v46 = vadd.f32 %v202_v38, %v192_v44  ;;  %v194_v47 = vpop.f32.mrb[3].mxu0  ;;  %vm213_vm2 = vcmp.gt.f32.partialorder %v209_v41, 0.0 }
  0xed   :  { %v218_v48 = vmul.f32 0.01, %v210_v43  ;;  %v212_v49 = vadd.f32 %v206_v39, %v194_v47  ;;  %vm214_vm4 = vcmp.gt.f32.partialorder %v210_v43, 0.0 }
  0xee   :  { %vm215_vm3 = vcmp.gt.f32.partialorder %v211_v46, 0.0  ;;  %v219_v50 = vmul.f32 0.01, %v211_v46  ;;  %v221_v52 = vsel %vm213_vm2, %v209_v41, %v217_v45 }
  0xef   :  { %v220_v51 = vmul.f32 0.01, %v212_v49  ;;  %vm216_vm5 = vcmp.gt.f32.partialorder %v212_v49, 0.0  ;;  %v222_v54 = vsel %vm214_vm4, %v210_v43, %v218_v48 }
  0xf0   :  { %v223_v53 = vsel %vm215_vm3, %v211_v46, %v219_v50 }
  0xf1   :  { %v224_v55 = vsel %vm216_vm5, %v212_v49, %v220_v51  ;;  %v225_v56 = vpack.c.bf16 %v223_v53, %v221_v52 }
  0xf2   :  { %v226_v57 = vpack.c.bf16 %v224_v55, %v222_v54 }
  0xf4   :  { %394 = vmatprep.mubr.bf16.mxu1 %v226_v57 }
  0xf5   :  { %395 = vmatmul.mubr.bf16.vlgmr.msra.gmra.mrb[0].mxu1 %v225_v56 }
 0x1c8   :  { %v624_v61 = vpop.f32.mrb[0].mxu1 }
 0x1c9   :  { %v625_v63 = vpop.f32.mrb[1].mxu1 }
 0x1ca   :  { %v626_v0 = vadd.f32 %v625_v63, %v624_v61  ;;  %v627_v1 = vpop.f32.mrb[2].mxu1 }
 0x1cb   :  { %v628_v2 = vpop.f32.mrb[3].mxu1 }
 0x1cc   :  { %v397_v3 = vadd.f32 %v626_v0, %v582_v62  ;;  %v629_v4 = vadd.f32 %v628_v2, %v627_v1 }
 0x1ce   :  { %v405_v5 = vmul.f32 0.01, %v397_v3  ;;  %v400_v6 = vadd.f32 %v629_v4, %v582_v62  ;;  %vm403_vm7 = vcmp.gt.f32.partialorder %v397_v3, 0.0 }
 0x1d0   :  { %vm404_vm8 = vcmp.gt.f32.partialorder %v400_v6, 0.0  ;;  %v406_v7 = vmul.f32 0.01, %v400_v6  ;;  %v407_v8 = vsel %vm403_vm7, %v397_v3, %v405_v5 }
 0x1d2   :  { %v408_v9 = vsel %vm404_vm8, %v400_v6, %v406_v7 }
 0x1d3   :  { %v409_v10 = vpack.c.bf16 %v408_v9, %v407_v8 }
 0x1d5   :  { %646 = vmatmul.mubr.msk.bf16.vlgmr.msra.gmra.mrb[4].mxu0 %vm449_vm9, %v409_v10 }
 0x1d6   :  { %651 = vmatprep.mubr.msk.bf16.mxu0 %vm697_vm6, %v696_v31  ;;  %650 = vmatpush3.bf16.msra.mxu0 %v694_v11 }
 0x2a8   :  { %v487_v14 = vpop.f32.mrb[4].mxu0 }
 0x2a9   :  { %v488_v15 = vadd.f32 %v599_v13, %v487_v14  ;;  %v647_v16 = vpop.f32.mrb[5].mxu0 }
 0x2aa   :  { %v490_v17 = vpop.f32.mrb[6].mxu0 }
 0x2ab   :  { %v496_v18 = vmul.f32 0.01, %v488_v15  ;;  %v491_v19 = vadd.f32 %v599_v13, %v490_v17  ;;  %v648_v20 = vpop.f32.mrb[7].mxu0  ;;  %vm494_vm10 = vcmp.gt.f32.partialorder %v488_v15, 0.0 }
 0x2ad   :  { %vm495_vm11 = vcmp.gt.f32.partialorder %v491_v19, 0.0  ;;  %v497_v21 = vmul.f32 0.01, %v491_v19  ;;  %v498_v22 = vsel %vm494_vm10, %v488_v15, %v496_v18 }
 0x2af   :  { %v499_v23 = vsel %vm495_vm11, %v491_v19, %v497_v21 }
 0x2b0   :  { %v500_v24 = vpack.c.bf16 %v499_v23, %v498_v22 }
 0x2b2   :  { %652 = vmatmul.mubr.msk.bf16.vlgmr.msra.gmra.mrb[8].mxu0 %vm516_vm12, %v500_v24 }
 0x385   :  { %v554_v26 = vpop.f32.mrb[8].mxu0 }
 0x386   :  { %v555_v27 = vadd.f32 %v605_v25, %v554_v26  ;;  %v653_v28 = vpop.f32.mrb[9].mxu0 }
 0x387   :  { %v557_v29 = vpop.f32.mrb[10].mxu0 }
 0x388   :  { %562 = vst.msk [vmem:[%s889_s11] sm:$0xff] %vm561_vm13, %v555_v27  ;;  %v558_v30 = vadd.f32 %v605_v25, %v557_v29  ;;  %v654_v31 = vpop.f32.mrb[11].mxu0 }
 0x38a   :  { %563 = vst.msk [vmem:[%s889_s11 + $0x8] sm:$0xff] %vm561_vm13, %v558_v30 }

</bundles_post_ra>
